<compile_context>
chip_gen: v7x
topology: tpu7x:2x2x1
jax: 0.10.0
libtpu: 0.0.40
codegen_flags: <defaults>
</compile_context>

<pallas_src>
import functools

import jax
import jax.numpy as jnp
from jax import lax
from jax.experimental import pallas as pl
from jax.experimental.pallas import tpu as pltpu


def _bottleneck_kernel(x_ref, w_ref, out_ref, xcol_ref, *, H, W, pad):
    # x_ref:    (1, Cin, H*W + 2*pad)  zero-padded, flattened NCHW image
    # w_ref:    (Cout, 9*Cin)          folded conv1*conv2*conv3 weights
    # out_ref:  (1, Cout, H*W)         lane-dense output block
    # xcol_ref: (9*Cin, H*W)           VMEM im2col scratch
    cin = x_ref.shape[1]
    hw = H * W

    # Border masks without vector integer division:
    #   row-valid(dh): 0 <= p + dh*W < H*W      (<=> 0 <= h+dh < H)
    #   col-valid(dw): 0 <= (p mod W) + dw < W
    pos = lax.broadcasted_iota(jnp.int32, (1, hw), 1)
    if (W & (W - 1)) == 0:
        w_idx = jnp.bitwise_and(pos, W - 1)     # cheap mod for power-of-two W
    else:
        w_idx = pos % W

    # Statically unrolled over the 9 taps; all slice starts are Python ints.
    for kh in range(3):
        for kw in range(3):
            dh = 2 * (kh - 1)
            dw = 2 * (kw - 1)
            shift = dh * W + dw
            # statically-offset lane slice of the padded flat image
            src = x_ref[0, :, pl.ds(pad + shift, hw)]            # (Cin, H*W)
            valid = ((pos + dh * W >= 0) & (pos + dh * W < hw) &
                     (w_idx + dw >= 0) & (w_idx + dw < W))
            t = kh * 3 + kw
            xcol_ref[t * cin:(t + 1) * cin, :] = jnp.where(valid, src, 0.0)

    # Single MXU matmul: (Cout, 9*Cin) @ (9*Cin, H*W) -> (Cout, H*W)
    y = jnp.dot(w_ref[...], xcol_ref[...],
                preferred_element_type=jnp.float32)
    out_ref[0] = y.astype(out_ref.dtype)


def bottleneck_pallas(x_nchw, w1_oihw, w2_oihw, w3_oihw):
    """x: (N, Cin, H, W) NCHW; weights in PyTorch OIHW layout, no biases."""
    N, Cin, H, W = x_nchw.shape
    Cout = w1_oihw.shape[0]
    HW = H * W
    PAD = 2 * W + 2                      # max |tap shift| in flattened HW space

    # ---- fold the three linear convs: M[t] = W3 @ W2[t] @ W1 (exact) ----
    W1 = w1_oihw[:, :, 0, 0].astype(jnp.float32)                 # (Cout, Cin)
    W3 = w3_oihw[:, :, 0, 0].astype(jnp.float32)                 # (Cout, Cout)
    W2 = jnp.transpose(w2_oihw, (2, 3, 0, 1)).reshape(9, Cout, Cout)
    M = jnp.einsum('ab,tbc,cd->tad', W3, W2.astype(jnp.float32), W1)
    w_eff = jnp.transpose(M, (1, 0, 2)).reshape(Cout, 9 * Cin)   # (Cout, 9*Cin)

    # ---- flatten HW and zero-pad so every tap is an in-bounds lane slice ----
    x_flat = x_nchw.reshape(N, Cin, HW).astype(jnp.float32)
    x_pad = jnp.pad(x_flat, ((0, 0), (0, 0), (PAD, PAD)))
    HWP = HW + 2 * PAD

    kernel = functools.partial(_bottleneck_kernel, H=H, W=W, pad=PAD)

    grid_spec = pltpu.PrefetchScalarGridSpec(
        num_scalar_prefetch=0,
        grid=(N,),
        in_specs=[
            pl.BlockSpec((1, Cin, HWP), lambda n: (n, 0, 0)),
            # constant block index -> weight stays resident across grid steps
            pl.BlockSpec((Cout, 9 * Cin), lambda n: (0, 0)),
        ],
        out_specs=pl.BlockSpec((1, Cout, HW), lambda n: (n, 0, 0)),
        scratch_shapes=[pltpu.VMEM((9 * Cin, HW), jnp.float32)],
    )

    out_flat = pl.pallas_call(
        kernel,
        out_shape=jax.ShapeDtypeStruct((N, Cout, HW), jnp.float32),
        grid_spec=grid_spec,
        compiler_params=pltpu.CompilerParams(
            dimension_semantics=("parallel",)),
    )(x_pad, w_eff)

    # zero-cost reshape back to NCHW (matches the PyTorch output layout)
    return out_flat.reshape(N, Cout, H, W)


def bottleneck_reference(x_nchw, w1, w2, w3):
    # pure-JAX reference matching PyTorch semantics (NCHW / OIHW)
    dn = ("NCHW", "OIHW", "NCHW")
    y = lax.conv_general_dilated(x_nchw, w1, (1, 1), "VALID",
                                 dimension_numbers=dn)
    y = lax.conv_general_dilated(y, w2, (1, 1), ((2, 2), (2, 2)),
                                 rhs_dilation=(2, 2), dimension_numbers=dn)
    y = lax.conv_general_dilated(y, w3, (1, 1), "VALID",
                                 dimension_numbers=dn)
    return y


if __name__ == "__main__":
    N, Cin, Cout, H, W = 2, 4, 8, 16, 16

    key = jax.random.PRNGKey(0)
    kx, k1, k2, k3 = jax.random.split(key, 4)

    x_nchw = jax.random.normal(kx, (N, Cin, H, W), dtype=jnp.float32)
    # PyTorch Conv2d weight shapes (O, I, kh, kw), no biases
    w1 = 0.1 * jax.random.normal(k1, (Cout, Cin, 1, 1), dtype=jnp.float32)
    w2 = 0.1 * jax.random.normal(k2, (Cout, Cout, 3, 3), dtype=jnp.float32)
    w3 = 0.1 * jax.random.normal(k3, (Cout, Cout, 1, 1), dtype=jnp.float32)

    out = bottleneck_pallas(x_nchw, w1, w2, w3)
    out = jax.block_until_ready(out)

    ref = bottleneck_reference(x_nchw, w1, w2, w3)
    assert out.shape == ref.shape == (N, Cout, H, W)
    max_err = float(jnp.max(jnp.abs(out - ref)))
    assert jnp.allclose(out, ref, atol=1e-4, rtol=1e-4), max_err

    print("KERNEL_OK")
</pallas_src>

<mosaic_0001>
module attributes {stable_mosaic.version = 11 : i64} {
  func.func @_bottleneck_kernel(%arg0: i32, %arg1: memref<1x4x324xf32, #tpu.memory_space<vmem>>, %arg2: memref<8x36xf32, #tpu.memory_space<vmem>>, %arg3: memref<1x8x256xf32, #tpu.memory_space<vmem>>, %arg4: memref<36x256xf32, #tpu.memory_space<vmem>>) attributes {dimension_semantics = [#tpu.dimension_semantics<parallel>], iteration_bounds = array<i64: 2>, scalar_prefetch = 0 : i64, scratch_operands = 1 : i64, tpu.core_type = #tpu.core_type<tc>, window_params = [{transform_indices = @transform_0, window_bounds = array<i64: 1, 4, 324>}, {pipeline_mode = #tpu.pipeline_mode<synchronous>, transform_indices = @transform_1, window_bounds = array<i64: 8, 36>}, {transform_indices = @transform_2, window_bounds = array<i64: 1, 8, 256>}]} {
    %0 = tpu.iota {dimensions = array<i32: 1>} : vector<1x256xi32>
    %c15_i32 = arith.constant 15 : i32
    %1 = vector.broadcast %c15_i32 : i32 to vector<1x256xi32>
    %2 = arith.andi %0, %1 : vector<1x256xi32>
    %c0 = arith.constant 0 : index
    %c0_0 = arith.constant 0 : index
    %c0_1 = arith.constant 0 : index
    %3 = vector.load %arg1[%c0, %c0_0, %c0_1] : memref<1x4x324xf32, #tpu.memory_space<vmem>>, vector<1x4x256xf32>
    %4 = vector.shape_cast %3 : vector<1x4x256xf32> to vector<4x256xf32>
    %c-32_i32 = arith.constant -32 : i32
    %5 = vector.broadcast %c-32_i32 : i32 to vector<1x256xi32>
    %6 = arith.addi %0, %5 : vector<1x256xi32>
    %c0_i32 = arith.constant 0 : i32
    %7 = vector.broadcast %c0_i32 : i32 to vector<1x256xi32>
    %8 = arith.cmpi sge, %6, %7 : vector<1x256xi32>
    %c-32_i32_2 = arith.constant -32 : i32
    %9 = vector.broadcast %c-32_i32_2 : i32 to vector<1x256xi32>
    %10 = arith.addi %0, %9 : vector<1x256xi32>
    %c256_i32 = arith.constant 256 : i32
    %11 = vector.broadcast %c256_i32 : i32 to vector<1x256xi32>
    %12 = arith.cmpi slt, %10, %11 : vector<1x256xi32>
    %13 = arith.andi %8, %12 : vector<1x256xi1>
    %c-2_i32 = arith.constant -2 : i32
    %14 = vector.broadcast %c-2_i32 : i32 to vector<1x256xi32>
    %15 = arith.addi %2, %14 : vector<1x256xi32>
    %c0_i32_3 = arith.constant 0 : i32
    %16 = vector.broadcast %c0_i32_3 : i32 to vector<1x256xi32>
    %17 = arith.cmpi sge, %15, %16 : vector<1x256xi32>
    %18 = arith.andi %13, %17 : vector<1x256xi1>
    %c-2_i32_4 = arith.constant -2 : i32
    %19 = vector.broadcast %c-2_i32_4 : i32 to vector<1x256xi32>
    %20 = arith.addi %2, %19 : vector<1x256xi32>
    %c16_i32 = arith.constant 16 : i32
    %21 = vector.broadcast %c16_i32 : i32 to vector<1x256xi32>
    %22 = arith.cmpi slt, %20, %21 : vector<1x256xi32>
    %23 = arith.andi %18, %22 : vector<1x256xi1>
    %cst = arith.constant 0.000000e+00 : f32
    %24 = vector.shape_cast %23 : vector<1x256xi1> to vector<1x256xi1>
    %25 = vector.broadcast %24 : vector<1x256xi1> to vector<4x256xi1>
    %26 = vector.broadcast %cst : f32 to vector<4x256xf32>
    %27 = arith.select %25, %4, %26 : vector<4x256xi1>, vector<4x256xf32>
    %c0_5 = arith.constant 0 : index
    %c0_6 = arith.constant 0 : index
    %28 = vector.load %arg4[%c0_5, %c0_6] : memref<36x256xf32, #tpu.memory_space<vmem>>, vector<4x256xf32>
    tpu.vector_store %arg4[%c0_5, %c0_6], %27 {strides = array<i32>} : memref<36x256xf32, #tpu.memory_space<vmem>>, vector<4x256xf32>,
    %c0_7 = arith.constant 0 : index
    %c0_8 = arith.constant 0 : index
    %c2 = arith.constant 2 : index
    %29 = vector.load %arg1[%c0_7, %c0_8, %c2] : memref<1x4x324xf32, #tpu.memory_space<vmem>>, vector<1x4x256xf32>
    %30 = vector.shape_cast %29 : vector<1x4x256xf32> to vector<4x256xf32>
    %c-32_i32_9 = arith.constant -32 : i32
    %31 = vector.broadcast %c-32_i32_9 : i32 to vector<1x256xi32>
    %32 = arith.addi %0, %31 : vector<1x256xi32>
    %c0_i32_10 = arith.constant 0 : i32
    %33 = vector.broadcast %c0_i32_10 : i32 to vector<1x256xi32>
    %34 = arith.cmpi sge, %32, %33 : vector<1x256xi32>
    %c-32_i32_11 = arith.constant -32 : i32
    %35 = vector.broadcast %c-32_i32_11 : i32 to vector<1x256xi32>
    %36 = arith.addi %0, %35 : vector<1x256xi32>
    %c256_i32_12 = arith.constant 256 : i32
    %37 = vector.broadcast %c256_i32_12 : i32 to vector<1x256xi32>
    %38 = arith.cmpi slt, %36, %37 : vector<1x256xi32>
    %39 = arith.andi %34, %38 : vector<1x256xi1>
    %c0_i32_13 = arith.constant 0 : i32
    %40 = vector.broadcast %c0_i32_13 : i32 to vector<1x256xi32>
    %41 = arith.addi %2, %40 : vector<1x256xi32>
    %c0_i32_14 = arith.constant 0 : i32
    %42 = vector.broadcast %c0_i32_14 : i32 to vector<1x256xi32>
    %43 = arith.cmpi sge, %41, %42 : vector<1x256xi32>
    %44 = arith.andi %39, %43 : vector<1x256xi1>
    %c0_i32_15 = arith.constant 0 : i32
    %45 = vector.broadcast %c0_i32_15 : i32 to vector<1x256xi32>
    %46 = arith.addi %2, %45 : vector<1x256xi32>
    %c16_i32_16 = arith.constant 16 : i32
    %47 = vector.broadcast %c16_i32_16 : i32 to vector<1x256xi32>
    %48 = arith.cmpi slt, %46, %47 : vector<1x256xi32>
    %49 = arith.andi %44, %48 : vector<1x256xi1>
    %cst_17 = arith.constant 0.000000e+00 : f32
    %50 = vector.shape_cast %49 : vector<1x256xi1> to vector<1x256xi1>
    %51 = vector.broadcast %50 : vector<1x256xi1> to vector<4x256xi1>
    %52 = vector.broadcast %cst_17 : f32 to vector<4x256xf32>
    %53 = arith.select %51, %30, %52 : vector<4x256xi1>, vector<4x256xf32>
    %c4 = arith.constant 4 : index
    %c0_18 = arith.constant 0 : index
    %54 = vector.load %arg4[%c4, %c0_18] : memref<36x256xf32, #tpu.memory_space<vmem>>, vector<4x256xf32>
    tpu.vector_store %arg4[%c4, %c0_18], %53 {strides = array<i32>} : memref<36x256xf32, #tpu.memory_space<vmem>>, vector<4x256xf32>,
    %c0_19 = arith.constant 0 : index
    %c0_20 = arith.constant 0 : index
    %c4_21 = arith.constant 4 : index
    %55 = vector.load %arg1[%c0_19, %c0_20, %c4_21] : memref<1x4x324xf32, #tpu.memory_space<vmem>>, vector<1x4x256xf32>
    %56 = vector.shape_cast %55 : vector<1x4x256xf32> to vector<4x256xf32>
    %c-32_i32_22 = arith.constant -32 : i32
    %57 = vector.broadcast %c-32_i32_22 : i32 to vector<1x256xi32>
    %58 = arith.addi %0, %57 : vector<1x256xi32>
    %c0_i32_23 = arith.constant 0 : i32
    %59 = vector.broadcast %c0_i32_23 : i32 to vector<1x256xi32>
    %60 = arith.cmpi sge, %58, %59 : vector<1x256xi32>
    %c-32_i32_24 = arith.constant -32 : i32
    %61 = vector.broadcast %c-32_i32_24 : i32 to vector<1x256xi32>
    %62 = arith.addi %0, %61 : vector<1x256xi32>
    %c256_i32_25 = arith.constant 256 : i32
    %63 = vector.broadcast %c256_i32_25 : i32 to vector<1x256xi32>
    %64 = arith.cmpi slt, %62, %63 : vector<1x256xi32>
    %65 = arith.andi %60, %64 : vector<1x256xi1>
    %c2_i32 = arith.constant 2 : i32
    %66 = vector.broadcast %c2_i32 : i32 to vector<1x256xi32>
    %67 = arith.addi %2, %66 : vector<1x256xi32>
    %c0_i32_26 = arith.constant 0 : i32
    %68 = vector.broadcast %c0_i32_26 : i32 to vector<1x256xi32>
    %69 = arith.cmpi sge, %67, %68 : vector<1x256xi32>
    %70 = arith.andi %65, %69 : vector<1x256xi1>
    %c2_i32_27 = arith.constant 2 : i32
    %71 = vector.broadcast %c2_i32_27 : i32 to vector<1x256xi32>
    %72 = arith.addi %2, %71 : vector<1x256xi32>
    %c16_i32_28 = arith.constant 16 : i32
    %73 = vector.broadcast %c16_i32_28 : i32 to vector<1x256xi32>
    %74 = arith.cmpi slt, %72, %73 : vector<1x256xi32>
    %75 = arith.andi %70, %74 : vector<1x256xi1>
    %cst_29 = arith.constant 0.000000e+00 : f32
    %76 = vector.shape_cast %75 : vector<1x256xi1> to vector<1x256xi1>
    %77 = vector.broadcast %76 : vector<1x256xi1> to vector<4x256xi1>
    %78 = vector.broadcast %cst_29 : f32 to vector<4x256xf32>
    %79 = arith.select %77, %56, %78 : vector<4x256xi1>, vector<4x256xf32>
    %c8 = arith.constant 8 : index
    %c0_30 = arith.constant 0 : index
    %80 = vector.load %arg4[%c8, %c0_30] : memref<36x256xf32, #tpu.memory_space<vmem>>, vector<4x256xf32>
    tpu.vector_store %arg4[%c8, %c0_30], %79 {strides = array<i32>} : memref<36x256xf32, #tpu.memory_space<vmem>>, vector<4x256xf32>,
    %c0_31 = arith.constant 0 : index
    %c0_32 = arith.constant 0 : index
    %c32 = arith.constant 32 : index
    %81 = vector.load %arg1[%c0_31, %c0_32, %c32] : memref<1x4x324xf32, #tpu.memory_space<vmem>>, vector<1x4x256xf32>
    %82 = vector.shape_cast %81 : vector<1x4x256xf32> to vector<4x256xf32>
    %c0_i32_33 = arith.constant 0 : i32
    %83 = vector.broadcast %c0_i32_33 : i32 to vector<1x256xi32>
    %84 = arith.addi %0, %83 : vector<1x256xi32>
    %c0_i32_34 = arith.constant 0 : i32
    %85 = vector.broadcast %c0_i32_34 : i32 to vector<1x256xi32>
    %86 = arith.cmpi sge, %84, %85 : vector<1x256xi32>
    %c0_i32_35 = arith.constant 0 : i32
    %87 = vector.broadcast %c0_i32_35 : i32 to vector<1x256xi32>
    %88 = arith.addi %0, %87 : vector<1x256xi32>
    %c256_i32_36 = arith.constant 256 : i32
    %89 = vector.broadcast %c256_i32_36 : i32 to vector<1x256xi32>
    %90 = arith.cmpi slt, %88, %89 : vector<1x256xi32>
    %91 = arith.andi %86, %90 : vector<1x256xi1>
    %c-2_i32_37 = arith.constant -2 : i32
    %92 = vector.broadcast %c-2_i32_37 : i32 to vector<1x256xi32>
    %93 = arith.addi %2, %92 : vector<1x256xi32>
    %c0_i32_38 = arith.constant 0 : i32
    %94 = vector.broadcast %c0_i32_38 : i32 to vector<1x256xi32>
    %95 = arith.cmpi sge, %93, %94 : vector<1x256xi32>
    %96 = arith.andi %91, %95 : vector<1x256xi1>
    %c-2_i32_39 = arith.constant -2 : i32
    %97 = vector.broadcast %c-2_i32_39 : i32 to vector<1x256xi32>
    %98 = arith.addi %2, %97 : vector<1x256xi32>
    %c16_i32_40 = arith.constant 16 : i32
    %99 = vector.broadcast %c16_i32_40 : i32 to vector<1x256xi32>
    %100 = arith.cmpi slt, %98, %99 : vector<1x256xi32>
    %101 = arith.andi %96, %100 : vector<1x256xi1>
    %cst_41 = arith.constant 0.000000e+00 : f32
    %102 = vector.shape_cast %101 : vector<1x256xi1> to vector<1x256xi1>
    %103 = vector.broadcast %102 : vector<1x256xi1> to vector<4x256xi1>
    %104 = vector.broadcast %cst_41 : f32 to vector<4x256xf32>
    %105 = arith.select %103, %82, %104 : vector<4x256xi1>, vector<4x256xf32>
    %c12 = arith.constant 12 : index
    %c0_42 = arith.constant 0 : index
    %106 = vector.load %arg4[%c12, %c0_42] : memref<36x256xf32, #tpu.memory_space<vmem>>, vector<4x256xf32>
    tpu.vector_store %arg4[%c12, %c0_42], %105 {strides = array<i32>} : memref<36x256xf32, #tpu.memory_space<vmem>>, vector<4x256xf32>,
    %c0_43 = arith.constant 0 : index
    %c0_44 = arith.constant 0 : index
    %c34 = arith.constant 34 : index
    %107 = vector.load %arg1[%c0_43, %c0_44, %c34] : memref<1x4x324xf32, #tpu.memory_space<vmem>>, vector<1x4x256xf32>
    %108 = vector.shape_cast %107 : vector<1x4x256xf32> to vector<4x256xf32>
    %c0_i32_45 = arith.constant 0 : i32
    %109 = vector.broadcast %c0_i32_45 : i32 to vector<1x256xi32>
    %110 = arith.addi %0, %109 : vector<1x256xi32>
    %c0_i32_46 = arith.constant 0 : i32
    %111 = vector.broadcast %c0_i32_46 : i32 to vector<1x256xi32>
    %112 = arith.cmpi sge, %110, %111 : vector<1x256xi32>
    %c0_i32_47 = arith.constant 0 : i32
    %113 = vector.broadcast %c0_i32_47 : i32 to vector<1x256xi32>
    %114 = arith.addi %0, %113 : vector<1x256xi32>
    %c256_i32_48 = arith.constant 256 : i32
    %115 = vector.broadcast %c256_i32_48 : i32 to vector<1x256xi32>
    %116 = arith.cmpi slt, %114, %115 : vector<1x256xi32>
    %117 = arith.andi %112, %116 : vector<1x256xi1>
    %c0_i32_49 = arith.constant 0 : i32
    %118 = vector.broadcast %c0_i32_49 : i32 to vector<1x256xi32>
    %119 = arith.addi %2, %118 : vector<1x256xi32>
    %c0_i32_50 = arith.constant 0 : i32
    %120 = vector.broadcast %c0_i32_50 : i32 to vector<1x256xi32>
    %121 = arith.cmpi sge, %119, %120 : vector<1x256xi32>
    %122 = arith.andi %117, %121 : vector<1x256xi1>
    %c0_i32_51 = arith.constant 0 : i32
    %123 = vector.broadcast %c0_i32_51 : i32 to vector<1x256xi32>
    %124 = arith.addi %2, %123 : vector<1x256xi32>
    %c16_i32_52 = arith.constant 16 : i32
    %125 = vector.broadcast %c16_i32_52 : i32 to vector<1x256xi32>
    %126 = arith.cmpi slt, %124, %125 : vector<1x256xi32>
    %127 = arith.andi %122, %126 : vector<1x256xi1>
    %cst_53 = arith.constant 0.000000e+00 : f32
    %128 = vector.shape_cast %127 : vector<1x256xi1> to vector<1x256xi1>
    %129 = vector.broadcast %128 : vector<1x256xi1> to vector<4x256xi1>
    %130 = vector.broadcast %cst_53 : f32 to vector<4x256xf32>
    %131 = arith.select %129, %108, %130 : vector<4x256xi1>, vector<4x256xf32>
    %c16 = arith.constant 16 : index
    %c0_54 = arith.constant 0 : index
    %132 = vector.load %arg4[%c16, %c0_54] : memref<36x256xf32, #tpu.memory_space<vmem>>, vector<4x256xf32>
    tpu.vector_store %arg4[%c16, %c0_54], %131 {strides = array<i32>} : memref<36x256xf32, #tpu.memory_space<vmem>>, vector<4x256xf32>,
    %c0_55 = arith.constant 0 : index
    %c0_56 = arith.constant 0 : index
    %c36 = arith.constant 36 : index
    %133 = vector.load %arg1[%c0_55, %c0_56, %c36] : memref<1x4x324xf32, #tpu.memory_space<vmem>>, vector<1x4x256xf32>
    %134 = vector.shape_cast %133 : vector<1x4x256xf32> to vector<4x256xf32>
    %c0_i32_57 = arith.constant 0 : i32
    %135 = vector.broadcast %c0_i32_57 : i32 to vector<1x256xi32>
    %136 = arith.addi %0, %135 : vector<1x256xi32>
    %c0_i32_58 = arith.constant 0 : i32
    %137 = vector.broadcast %c0_i32_58 : i32 to vector<1x256xi32>
    %138 = arith.cmpi sge, %136, %137 : vector<1x256xi32>
    %c0_i32_59 = arith.constant 0 : i32
    %139 = vector.broadcast %c0_i32_59 : i32 to vector<1x256xi32>
    %140 = arith.addi %0, %139 : vector<1x256xi32>
    %c256_i32_60 = arith.constant 256 : i32
    %141 = vector.broadcast %c256_i32_60 : i32 to vector<1x256xi32>
    %142 = arith.cmpi slt, %140, %141 : vector<1x256xi32>
    %143 = arith.andi %138, %142 : vector<1x256xi1>
    %c2_i32_61 = arith.constant 2 : i32
    %144 = vector.broadcast %c2_i32_61 : i32 to vector<1x256xi32>
    %145 = arith.addi %2, %144 : vector<1x256xi32>
    %c0_i32_62 = arith.constant 0 : i32
    %146 = vector.broadcast %c0_i32_62 : i32 to vector<1x256xi32>
    %147 = arith.cmpi sge, %145, %146 : vector<1x256xi32>
    %148 = arith.andi %143, %147 : vector<1x256xi1>
    %c2_i32_63 = arith.constant 2 : i32
    %149 = vector.broadcast %c2_i32_63 : i32 to vector<1x256xi32>
    %150 = arith.addi %2, %149 : vector<1x256xi32>
    %c16_i32_64 = arith.constant 16 : i32
    %151 = vector.broadcast %c16_i32_64 : i32 to vector<1x256xi32>
    %152 = arith.cmpi slt, %150, %151 : vector<1x256xi32>
    %153 = arith.andi %148, %152 : vector<1x256xi1>
    %cst_65 = arith.constant 0.000000e+00 : f32
    %154 = vector.shape_cast %153 : vector<1x256xi1> to vector<1x256xi1>
    %155 = vector.broadcast %154 : vector<1x256xi1> to vector<4x256xi1>
    %156 = vector.broadcast %cst_65 : f32 to vector<4x256xf32>
    %157 = arith.select %155, %134, %156 : vector<4x256xi1>, vector<4x256xf32>
    %c20 = arith.constant 20 : index
    %c0_66 = arith.constant 0 : index
    %158 = vector.load %arg4[%c20, %c0_66] : memref<36x256xf32, #tpu.memory_space<vmem>>, vector<4x256xf32>
    tpu.vector_store %arg4[%c20, %c0_66], %157 {strides = array<i32>} : memref<36x256xf32, #tpu.memory_space<vmem>>, vector<4x256xf32>,
    %c0_67 = arith.constant 0 : index
    %c0_68 = arith.constant 0 : index
    %c64 = arith.constant 64 : index
    %159 = vector.load %arg1[%c0_67, %c0_68, %c64] : memref<1x4x324xf32, #tpu.memory_space<vmem>>, vector<1x4x256xf32>
    %160 = vector.shape_cast %159 : vector<1x4x256xf32> to vector<4x256xf32>
    %c32_i32 = arith.constant 32 : i32
    %161 = vector.broadcast %c32_i32 : i32 to vector<1x256xi32>
    %162 = arith.addi %0, %161 : vector<1x256xi32>
    %c0_i32_69 = arith.constant 0 : i32
    %163 = vector.broadcast %c0_i32_69 : i32 to vector<1x256xi32>
    %164 = arith.cmpi sge, %162, %163 : vector<1x256xi32>
    %c32_i32_70 = arith.constant 32 : i32
    %165 = vector.broadcast %c32_i32_70 : i32 to vector<1x256xi32>
    %166 = arith.addi %0, %165 : vector<1x256xi32>
    %c256_i32_71 = arith.constant 256 : i32
    %167 = vector.broadcast %c256_i32_71 : i32 to vector<1x256xi32>
    %168 = arith.cmpi slt, %166, %167 : vector<1x256xi32>
    %169 = arith.andi %164, %168 : vector<1x256xi1>
    %c-2_i32_72 = arith.constant -2 : i32
    %170 = vector.broadcast %c-2_i32_72 : i32 to vector<1x256xi32>
    %171 = arith.addi %2, %170 : vector<1x256xi32>
    %c0_i32_73 = arith.constant 0 : i32
    %172 = vector.broadcast %c0_i32_73 : i32 to vector<1x256xi32>
    %173 = arith.cmpi sge, %171, %172 : vector<1x256xi32>
    %174 = arith.andi %169, %173 : vector<1x256xi1>
    %c-2_i32_74 = arith.constant -2 : i32
    %175 = vector.broadcast %c-2_i32_74 : i32 to vector<1x256xi32>
    %176 = arith.addi %2, %175 : vector<1x256xi32>
    %c16_i32_75 = arith.constant 16 : i32
    %177 = vector.broadcast %c16_i32_75 : i32 to vector<1x256xi32>
    %178 = arith.cmpi slt, %176, %177 : vector<1x256xi32>
    %179 = arith.andi %174, %178 : vector<1x256xi1>
    %cst_76 = arith.constant 0.000000e+00 : f32
    %180 = vector.shape_cast %179 : vector<1x256xi1> to vector<1x256xi1>
    %181 = vector.broadcast %180 : vector<1x256xi1> to vector<4x256xi1>
    %182 = vector.broadcast %cst_76 : f32 to vector<4x256xf32>
    %183 = arith.select %181, %160, %182 : vector<4x256xi1>, vector<4x256xf32>
    %c24 = arith.constant 24 : index
    %c0_77 = arith.constant 0 : index
    %184 = vector.load %arg4[%c24, %c0_77] : memref<36x256xf32, #tpu.memory_space<vmem>>, vector<4x256xf32>
    tpu.vector_store %arg4[%c24, %c0_77], %183 {strides = array<i32>} : memref<36x256xf32, #tpu.memory_space<vmem>>, vector<4x256xf32>,
    %c0_78 = arith.constant 0 : index
    %c0_79 = arith.constant 0 : index
    %c66 = arith.constant 66 : index
    %185 = vector.load %arg1[%c0_78, %c0_79, %c66] : memref<1x4x324xf32, #tpu.memory_space<vmem>>, vector<1x4x256xf32>
    %186 = vector.shape_cast %185 : vector<1x4x256xf32> to vector<4x256xf32>
    %c32_i32_80 = arith.constant 32 : i32
    %187 = vector.broadcast %c32_i32_80 : i32 to vector<1x256xi32>
    %188 = arith.addi %0, %187 : vector<1x256xi32>
    %c0_i32_81 = arith.constant 0 : i32
    %189 = vector.broadcast %c0_i32_81 : i32 to vector<1x256xi32>
    %190 = arith.cmpi sge, %188, %189 : vector<1x256xi32>
    %c32_i32_82 = arith.constant 32 : i32
    %191 = vector.broadcast %c32_i32_82 : i32 to vector<1x256xi32>
    %192 = arith.addi %0, %191 : vector<1x256xi32>
    %c256_i32_83 = arith.constant 256 : i32
    %193 = vector.broadcast %c256_i32_83 : i32 to vector<1x256xi32>
    %194 = arith.cmpi slt, %192, %193 : vector<1x256xi32>
    %195 = arith.andi %190, %194 : vector<1x256xi1>
    %c0_i32_84 = arith.constant 0 : i32
    %196 = vector.broadcast %c0_i32_84 : i32 to vector<1x256xi32>
    %197 = arith.addi %2, %196 : vector<1x256xi32>
    %c0_i32_85 = arith.constant 0 : i32
    %198 = vector.broadcast %c0_i32_85 : i32 to vector<1x256xi32>
    %199 = arith.cmpi sge, %197, %198 : vector<1x256xi32>
    %200 = arith.andi %195, %199 : vector<1x256xi1>
    %c0_i32_86 = arith.constant 0 : i32
    %201 = vector.broadcast %c0_i32_86 : i32 to vector<1x256xi32>
    %202 = arith.addi %2, %201 : vector<1x256xi32>
    %c16_i32_87 = arith.constant 16 : i32
    %203 = vector.broadcast %c16_i32_87 : i32 to vector<1x256xi32>
    %204 = arith.cmpi slt, %202, %203 : vector<1x256xi32>
    %205 = arith.andi %200, %204 : vector<1x256xi1>
    %cst_88 = arith.constant 0.000000e+00 : f32
    %206 = vector.shape_cast %205 : vector<1x256xi1> to vector<1x256xi1>
    %207 = vector.broadcast %206 : vector<1x256xi1> to vector<4x256xi1>
    %208 = vector.broadcast %cst_88 : f32 to vector<4x256xf32>
    %209 = arith.select %207, %186, %208 : vector<4x256xi1>, vector<4x256xf32>
    %c28 = arith.constant 28 : index
    %c0_89 = arith.constant 0 : index
    %210 = vector.load %arg4[%c28, %c0_89] : memref<36x256xf32, #tpu.memory_space<vmem>>, vector<4x256xf32>
    tpu.vector_store %arg4[%c28, %c0_89], %209 {strides = array<i32>} : memref<36x256xf32, #tpu.memory_space<vmem>>, vector<4x256xf32>,
    %c0_90 = arith.constant 0 : index
    %c0_91 = arith.constant 0 : index
    %c68 = arith.constant 68 : index
    %211 = vector.load %arg1[%c0_90, %c0_91, %c68] : memref<1x4x324xf32, #tpu.memory_space<vmem>>, vector<1x4x256xf32>
    %212 = vector.shape_cast %211 : vector<1x4x256xf32> to vector<4x256xf32>
    %c32_i32_92 = arith.constant 32 : i32
    %213 = vector.broadcast %c32_i32_92 : i32 to vector<1x256xi32>
    %214 = arith.addi %0, %213 : vector<1x256xi32>
    %c0_i32_93 = arith.constant 0 : i32
    %215 = vector.broadcast %c0_i32_93 : i32 to vector<1x256xi32>
    %216 = arith.cmpi sge, %214, %215 : vector<1x256xi32>
    %c32_i32_94 = arith.constant 32 : i32
    %217 = vector.broadcast %c32_i32_94 : i32 to vector<1x256xi32>
    %218 = arith.addi %0, %217 : vector<1x256xi32>
    %c256_i32_95 = arith.constant 256 : i32
    %219 = vector.broadcast %c256_i32_95 : i32 to vector<1x256xi32>
    %220 = arith.cmpi slt, %218, %219 : vector<1x256xi32>
    %221 = arith.andi %216, %220 : vector<1x256xi1>
    %c2_i32_96 = arith.constant 2 : i32
    %222 = vector.broadcast %c2_i32_96 : i32 to vector<1x256xi32>
    %223 = arith.addi %2, %222 : vector<1x256xi32>
    %c0_i32_97 = arith.constant 0 : i32
    %224 = vector.broadcast %c0_i32_97 : i32 to vector<1x256xi32>
    %225 = arith.cmpi sge, %223, %224 : vector<1x256xi32>
    %226 = arith.andi %221, %225 : vector<1x256xi1>
    %c2_i32_98 = arith.constant 2 : i32
    %227 = vector.broadcast %c2_i32_98 : i32 to vector<1x256xi32>
    %228 = arith.addi %2, %227 : vector<1x256xi32>
    %c16_i32_99 = arith.constant 16 : i32
    %229 = vector.broadcast %c16_i32_99 : i32 to vector<1x256xi32>
    %230 = arith.cmpi slt, %228, %229 : vector<1x256xi32>
    %231 = arith.andi %226, %230 : vector<1x256xi1>
    %cst_100 = arith.constant 0.000000e+00 : f32
    %232 = vector.shape_cast %231 : vector<1x256xi1> to vector<1x256xi1>
    %233 = vector.broadcast %232 : vector<1x256xi1> to vector<4x256xi1>
    %234 = vector.broadcast %cst_100 : f32 to vector<4x256xf32>
    %235 = arith.select %233, %212, %234 : vector<4x256xi1>, vector<4x256xf32>
    %c32_101 = arith.constant 32 : index
    %c0_102 = arith.constant 0 : index
    %236 = vector.load %arg4[%c32_101, %c0_102] : memref<36x256xf32, #tpu.memory_space<vmem>>, vector<4x256xf32>
    tpu.vector_store %arg4[%c32_101, %c0_102], %235 {strides = array<i32>} : memref<36x256xf32, #tpu.memory_space<vmem>>, vector<4x256xf32>,
    %c0_103 = arith.constant 0 : index
    %c0_104 = arith.constant 0 : index
    %237 = vector.load %arg2[%c0_103, %c0_104] : memref<8x36xf32, #tpu.memory_space<vmem>>, vector<8x36xf32>
    %c0_105 = arith.constant 0 : index
    %c0_106 = arith.constant 0 : index
    %238 = vector.load %arg4[%c0_105, %c0_106] : memref<36x256xf32, #tpu.memory_space<vmem>>, vector<36x256xf32>
    %cst_107 = arith.constant dense<0.000000e+00> : vector<8x256xf32>
    %239 = tpu.matmul %237, %238, %cst_107 {dimension_numbers = #tpu.dot_dimension_numbers<[1], [0], [0], [1], [0, 0, 1, 1], [], []>} : vector<8x36xf32>, vector<36x256xf32>, vector<8x256xf32> -> vector<8x256xf32>
    %c0_108 = arith.constant 0 : index
    %c0_109 = arith.constant 0 : index
    %c0_110 = arith.constant 0 : index
    %240 = vector.load %arg3[%c0_108, %c0_109, %c0_110] : memref<1x8x256xf32, #tpu.memory_space<vmem>>, vector<1x8x256xf32>
    %241 = vector.shape_cast %240 : vector<1x8x256xf32> to vector<8x256xf32>
    %242 = vector.shape_cast %239 : vector<8x256xf32> to vector<1x8x256xf32>
    tpu.vector_store %arg3[%c0_108, %c0_109, %c0_110], %242 {strides = array<i32>} : memref<1x8x256xf32, #tpu.memory_space<vmem>>, vector<1x8x256xf32>,
    return
  }
  func.func @transform_0(%arg0: i32) -> (i32, i32, i32) {
    %c0_i32 = arith.constant 0 : i32
    %c0_i32_0 = arith.constant 0 : i32
    %c0_i32_1 = arith.constant 0 : i32
    return %arg0, %c0_i32, %c0_i32_0 : i32, i32, i32
  }
  func.func @transform_1(%arg0: i32) -> (i32, i32) {
    %c0_i32 = arith.constant 0 : i32
    %c0_i32_0 = arith.constant 0 : i32
    %c0_i32_1 = arith.constant 0 : i32
    return %c0_i32, %c0_i32_0 : i32, i32
  }
  func.func @transform_2(%arg0: i32) -> (i32, i32, i32) {
    %c0_i32 = arith.constant 0 : i32
    %c0_i32_0 = arith.constant 0 : i32
    %c0_i32_1 = arith.constant 0 : i32
    return %arg0, %c0_i32, %c0_i32_0 : i32, i32, i32
  }
}

</mosaic_0001>

<bundles_post_ra>
// kernel: tpu_custom_call.1
= control target key start
LH: loop header
LB: loop body
LE: loop exit
PB: predicated region body
PF: predicated region fallthrough
CT: control target
= control target key end

     0   :  { %7 = vsyncpa [#allocation4], 0  ;;  %s1210_s0 = inlined_call_operand.hbm [shape: f32[2,4,324], index: 0, kind: input, shape index: {}]   ;;  %s1211_s1 = inlined_call_operand.hbm [shape: f32[8,36], index: 1, kind: input, shape index: {}]   ;;  %s1212_s2 = inlined_call_operand.hbm [shape: f32[2,8,256], index: 2, kind: output, shape index: {}]  }
   0x1   :  { %9 = vsyncpa [#allocation4 + $0x1], 0 }
   0x2   :  { %10 = vsyncpa [#allocation7], 0 }
   0x3   :  { %11 = vsyncpa [#allocation5], 0 }
   0x4   :  { %13 = vsyncpa [#allocation5 + $0x1], 0  ;;  %s922_s9 = smov 0   ;;  %s924_s10 = smov 0  }
   0x5   :  { %s926_s11 = smov 0   ;;  %s928_s12 = smov 0  }
   0x6 LB: > { %s943_s13 = sadd.s32 4294967295, %s893_s12   ;;  %s670_s14 = sadd.s32 4294967294, %s893_s12   ;;  %s893_s12 = sphi %s928_s12, %s1238_s12   ;;  %s889_s11 = sphi %s926_s11, %s1237_s11   ;;  %s885_s10 = sphi %s924_s10, %s1236_s10   ;;  %s881_s9 = sphi %s922_s9, %s1235_s9  }
   0x7   : > { %p39_p0 = scmp.ne.s32.totalorder %s885_s10, %s881_s9  ;;  %p1213_p1 = scmp.eq.s32.totalorder %s943_s13, 0 }
   0x8   : > { %p90_p3 = scmp.eq.s32.totalorder %s670_s14, 1  ;;  %p671_p5 = scmp.ge.s32.totalorder %s893_s12, 1 }
   0x9   : > { %p952_p4 = por %p1213_p1, %p39_p0  ;;  %p97_p7 = scmp.lt.s32.totalorder %s893_s12, 3 }
   0xa   : > { %p957_p6 = por %p90_p3, %p39_p0  ;;  %s895_s18 = smov [#allocation6]  }
   0xb   : > { %s1216_s15 = scalar_select %p952_p4, 1, 0 }
   0xc   : > { %s1217_s16 = scalar_select %p957_p6, 1, 0 }
   0xd   : > { %p962_p8 = pnand %p671_p5, %p97_p7  ;;  %s110_s19 = sshll.u32 %s895_s18, 4  ;;  %s111_s19 = int_to_ptr.vmem [resolvable:$true] %s110_s19 }
   0xe   : > { %s970_s20 = sadd.s32 1, %s893_s12   ;;  %s26_s24 = sadd.s32 1, %s889_s11 }
   0xf   : > { %s1218_s17 = scalar_select %p962_p8, 1, 0 }
  0x10   : > { %p706_p10 = pneg %p962_p8  ;;  %s23_s22 = ssub.s32 %s893_s12, %s970_s20 }
  0x11   : > { %p980_p12 = scmp.eq.s32.totalorder %s23_s22, 0  ;;  %s765_s27 = scalar_lea.hbm %s1211_s1, 128 }
  0x12   : > { %p974_p11 = pnand %p706_p10, %p1213_p1  ;;  %p766_p0 = scmp.ne.s32.totalorder %s1211_s1, %s765_s27 }
  0x13   : > { %s1220_s23 = scalar_select %p980_p12, 1, 0 }
  0x14   : > { %p767_p3 = pneg %p974_p11  ;;  %p772_p10 = scmp.lt.u32.totalorder %s765_s27, %s1211_s1 }
  0x16   : > { %p768_p5 = pnand %p767_p3, %p766_p0 }
  0x18   : > { %p769_p7 = pneg %p768_p5 }
  0x1a   : > { %p774_p9 = pnand %p772_p10, %p769_p7 }
  0x1c   : > { %777 = shalt.err (!%p774_p9)
}
  0x1d   : > { %s778_s4 = scalar_lea.vmem %s111_s19, 128  ;;  %p786_p6 = scmp.lt.s32.totalorder %s111_s19, %s111_s19 }
  0x1e   : > { %p779_p1 = scmp.ne.s32.totalorder %s111_s19, %s778_s4  ;;  %p787_p4 = scmp.lt.s32.totalorder %s778_s4, %s778_s4 }
  0x20   : > { %p781_p2 = pnand %p779_p1, %p767_p3  ;;  %p788_p8 = por %p787_p4, %p786_p6 }
  0x22   : > { %p782_p13 = pneg %p781_p2 }
  0x24   : > { %p789_p12 = pnand %p788_p8, %p782_p13 }
  0x26   : > { %792 = shalt.err (!%p789_p12)
}
  0x27   : > { %709 = dma.hbm_to_vmem [thread:$0]  (!%p974_p11), %s1211_s1, 128, %s111_s19, [#allocation7]  }
  0x28   : > { %p1221_p1 = scmp.ne.s32.totalorder %s1220_s23, 0  ;;  %p34_p2 = scmp.eq.s32.totalorder %s893_s12, 0 }
  0x29   : > { %p1222_p4 = scmp.ne.s32.totalorder %s889_s11, %s885_s10  ;;  %p1223_p6 = scmp.eq.s32.totalorder %s943_s13, 1 }
  0x2a   : > { %s1006_s7 = scalar_select %p1221_p1, %s889_s11, %s26_s24  }
  0x2b   : > { %p1014_p8 = por %p1223_p6, %p1222_p4  ;;  %p719_p9 = scmp.lt.s32.totalorder %s893_s12, 2 }
  0x2c   : > { %s121_s14 = sand.u32 1, %s889_s11   ;;  %p1225_p12 = pmov %p1222_p4 }
  0x2d   : > { %s695_s18 = smul.u32 12, %s121_s14  ;;  %s122_s27 = scalar_lea.sflag [#allocation4], %s121_s14 }
  0x2e   : > { %p35_p13 = por %p34_p2, %p1225_p12  ;;  %s696_s21 = smul.u32 192, %s893_s12 }
  0x2f   : > { %s125_s25 = scalar_lea.vmem [#allocation3], %s695_s18  ;;  %s798_s3 = scalar_lea.hbm %s1210_s0, 384 }
  0x30   : > { %p1024_p0 = pnand %p719_p9, %p35_p13  ;;  %s1031_s24 = scalar_lea.hbm %s1210_s0, %s696_s21 }
  0x31   : > { %s133_s26 = sshll.u32 %s125_s25, 4  ;;  %s793_s28 = scalar_lea.hbm %s1031_s24, 192  ;;  %s1033_s26 = int_to_ptr.vmem [resolvable:$true] %s133_s26 }
  0x32   : > { %p794_p11 = scmp.ne.s32.totalorder %s1031_s24, %s793_s28  ;;  %p795_p3 = pneg %p1024_p0 }
  0x33   : > { %p799_p10 = scmp.lt.u32.totalorder %s1031_s24, %s1210_s0  ;;  %p800_p1 = scmp.lt.u32.totalorder %s798_s3, %s793_s28 }
  0x34   : > { %p796_p5 = pnand %p795_p3, %p794_p11  ;;  %p802_p4 = scmp.lt.u32.totalorder %s793_s28, %s1031_s24 }
  0x35   : > { %p801_p2 = por %p800_p1, %p799_p10 }
  0x36   : > { %p797_p7 = pneg %p796_p5 }
  0x37   : > { %p803_p6 = por %p802_p4, %p801_p2 }
  0x39   : > { %p804_p9 = pnand %p803_p6, %p797_p7 }
  0x3b   : > { %807 = shalt.err (!%p804_p9)
}
  0x3c   : > { %s808_s6 = scalar_lea.vmem %s1033_s26, 192  ;;  %s896_s14 = smov [#allocation3]  }
  0x3d   : > { %p809_p12 = scmp.ne.s32.totalorder %s1033_s26, %s808_s6  ;;  %s813_s18 = sshll.u32 %s896_s14, 4  ;;  %s814_s18 = int_to_ptr.vmem [resolvable:$false] %s813_s18 }
  0x3e   : > { %s815_s21 = scalar_lea.vmem %s814_s18, 384  ;;  %p816_p5 = scmp.lt.s32.totalorder %s1033_s26, %s814_s18 }
  0x3f   : > { %p811_p13 = pnand %p809_p12, %p795_p3  ;;  %p817_p10 = scmp.lt.s32.totalorder %s815_s21, %s808_s6 }
  0x41   : > { %p812_p11 = pneg %p811_p13  ;;  %p818_p1 = por %p817_p10, %p816_p5 }
  0x43   : > { %p819_p2 = pnand %p818_p1, %p812_p11 }
  0x45   : > { %822 = shalt.err (!%p819_p2)
}
  0x46   : > { %713 = dma.hbm_to_vmem [thread:$0]  (!%p1024_p0), %s1031_s24, 192, %s1033_s26, %s122_s27  }
  0x47   : > { %p1227_p7 = scmp.ne.s32.totalorder %s1218_s17, 0 }
  0x48   : > { %s1063_s19 = sand.u32 (!%p1227_p7), 1, %s885_s10   ;;  %p1228_p3 = scmp.ne.s32.totalorder (!%p1227_p7), %s1216_s15, 0 }
  0x49   : > { %142 = sbr.rel (%p1227_p7) target bundleno = 483 (0x1e3), region = 28  ;;  %s145_s25 = scalar_lea.sflag (!%p1227_p7), [#allocation4], %s1063_s19 }
  0x4a   : > { %s697_s23 = smul.u32 (!%p1227_p7), 12, %s1063_s19 }
  0x4c   : > { %s1067_s28 = scalar_lea.vmem (!%p1227_p7), [#allocation3], %s697_s23 }
  0x50   : > { %868 = dma.done.wait (%p1228_p3), %s145_s25, 192  }
  0x51   : > { %870 = vsyncadd (%p1228_p3), %s145_s25, 4294967104  ;;  %p1229_p0 = scmp.eq.s32.totalorder %s943_s13, 0 }
  0x53   : > { %872 = dma.done.wait (%p1229_p0), [#allocation7], 128   ;;  %p1230_p4 = pmov %p1229_p0 }
  0x54   : > { %v173_v0 = vlaneseq  ;;  %v281_v7 = vld [vmem:[%s1067_s28 + $0x8] sm:$0xf]  ;;  %v208_v8 = vld [vmem:[%s1067_s28] sm:$0xff]  ;;  %s897_s15 = smov 96   ;;  %s898_s17 = smov 126   ;;  %v905_v23 = vmov 0.0  }
  0x55   : > { %874 = vsyncadd (%p1230_p4), [#allocation7], 4294967168  ;;  %303 = vrot.lane.b32.xlu0 %v281_v7, %s897_s15  ;;  %225 = vrot.lane.b32.xlu1 %v208_v8, %s898_s17  ;;  %v224_v10 = vcombine.high %v208_v8, %v208_v8  ;;  %v209_v11 = vld [vmem:[%s1067_s28 + $0x8] sm:$0xf]  ;;  %s899_s22 = smov 124   ;;  %s900_s24 = smov 92  }
  0x56   : > { %v1077_v1 = vand.u32 127, %v173_v0  ;;  %v247_v14 = vld [vmem:[%s1067_s28 + $0x8] sm:$0xf]  ;;  %s901_s26 = smov 62   ;;  %s902_s27 = smov 64   ;;  %566 = vmatprep.mubr.f32.mxu0 %v905_v23  ;;  %vm305_vm7 = vcmask 785408  }
  0x57   : > { %v349_v15 = vld [vmem:[%s1067_s28 + $0x8] sm:$0xf]  ;;  %s903_s29 = smov 94   ;;  %s904_s30 = smov 60   ;;  %vm231_vm8 = vcmask 1031168   ;;  %vm271_vm9 = vcmask 1014784  }
  0x58   : > { %v175_v2 = vadd.s32 128, %v1077_v1  ;;  %v176_v3 = vand.u32 15, %v1077_v1  ;;  %v1082_v4 = vadd.s32 4294967264, %v1077_v1  ;;  %v419_v16 = vld [vmem:[%s1067_s28 + $0x8] sm:$0xf]  ;;  %vm367_vm12 = vcmask 752640  }
  0x59   : > { %229 = vrot.lane.b32.xlu0 %v209_v11, %s898_s17  ;;  %299 = vrot.lane.b32.xlu1 %v208_v8, %s897_s15  ;;  %v383_v19 = vld [vmem:[%s1067_s28 + $0x8] sm:$0xf]  ;;  %vm437_vm13 = vcmask 506880   ;;  %vm409_vm14 = vcmask 523264   ;;  %s677_s3 = sshll.u32 %s1063_s19, 4  ;;  %s686_s6 = sshll.u32 %s943_s13, 8 }
  0x5a   : > { %v177_v5 = vand.u32 15, %v175_v2  ;;  %v1086_v6 = vadd.s32 4294967294, %v176_v3  ;;  %vm181_vm0 = vcmp.ge.s32.totalorder %v1082_v4, 0  ;;  %v1107_v18 = vadd.s32 32, %v175_v2  ;;  %v321_v21 = vld [vmem:[%s1067_s28 + $0x8] sm:$0xf]  ;;  %s1168_s21 = scalar_lea.hbm %s1212_s2, %s686_s6 }
  0x5b   : > { %v453_v22 = vld [vmem:[%s1067_s28 + $0x8] sm:$0xf]  ;;  %v1124_v30 = vadd.s32 2, %v176_v3  ;;  %s172_s4 = scalar_lea.vmem [#allocation8], %s677_s3  ;;  %s576_s23 = scalar_lea.sflag [#allocation5], %s1063_s19 }
  0x5c   : > { %v1091_v9 = vadd.s32 4294967294, %v177_v5  ;;  %vm189_vm1 = vcmp.ge.s32.totalorder %v1086_v6, 0  ;;  %v1105_v17 = vadd.s32 2, %v177_v5  ;;  %vm389_vm5 = vcmp.lt.s32.totalorder %v1107_v18, 256  ;;  %s590_s5 = sshll.u32 %s172_s4, 4  ;;  %s906_s13 = smov [#allocation8]   ;;  %s1163_s5 = int_to_ptr.vmem [resolvable:$true] %s590_s5 }
  0x5d   : > { %vm191_vm3 = vmand %vm181_vm0, %vm189_vm1  ;;  %301 = vrot.lane.b32.xlu0 %v224_v10, %s897_s15  ;;  %227 = vrot.lane.b32.xlu1 %v224_v10, %s898_s17  ;;  %vm254_vm10 = vcmp.lt.s32.totalorder %v1124_v30, 16  ;;  %s823_s25 = scalar_lea.vmem %s1163_s5, 256  ;;  %s827_s28 = sshll.u32 %s906_s13, 4  ;;  %s828_s28 = int_to_ptr.vmem [resolvable:$false] %s827_s28 }
  0x5e   : > { %vm190_vm2 = vcmp.ge.s32.totalorder %v1091_v9, 0  ;;  %v204_v13 = vsel %vm191_vm3, %v208_v8, 0.0  ;;  %vm255_vm4 = vcmp.lt.s32.totalorder %v1105_v17, 16  ;;  %vm256_vm11 = vmand %vm181_vm0, %vm254_vm10  ;;  %vm491_vm3 = vcmask 293888   ;;  %p824_p6 = scmp.ne.s32.totalorder %s1163_s5, %s823_s25  ;;  %s829_s15 = scalar_lea.vmem %s828_s28, 512 }
  0x5f   : > { %v205_v12 = vsel %vm190_vm2, %v224_v10, 0.0  ;;  %206 = vst [vmem:[#allocation2] sm:$0xf] %v204_v13  ;;  %vm1116_vm6 = vmand %vm389_vm5, %vm255_vm4  ;;  %p830_p13 = scmp.lt.s32.totalorder %s1163_s5, %s828_s28  ;;  %p831_p11 = scmp.lt.s32.totalorder %s829_s15, %s823_s25 }
  0x60   : > { %207 = vst [vmem:[#allocation2 + $0x8] sm:$0xf] %v205_v12  ;;  %vm393_vm15 = vmand %vm389_vm5, %vm190_vm2  ;;  %p825_p9 = pnand %p824_p6, %p1014_p8 }
  0x61   : > { %267 = vrot.lane.b32.xlu0 %v224_v10, %s899_s22  ;;  %269 = vrot.lane.b32.xlu1 %v247_v14, %s899_s22  ;;  %p832_p5 = por %p831_p11, %p830_p13 }
  0x62   : > { %p826_p12 = pneg %p825_p9 }
  0x64   : > { %p833_p10 = pnand %p832_p5, %p826_p12 }
  0x65   : > { %265 = vrot.lane.b32.xlu0 %v208_v8, %s899_s22  ;;  %363 = vrot.lane.b32.xlu1 %v224_v10, %s900_s24 }
  0x69   : > { %365 = vrot.lane.b32.xlu0 %v349_v15, %s900_s24  ;;  %433 = vrot.lane.b32.xlu1 %v224_v10, %s901_s26 }
  0x6d   : > { %435 = vrot.lane.b32.xlu0 %v419_v16, %s901_s26  ;;  %361 = vrot.lane.b32.xlu1 %v208_v8, %s900_s24 }
  0x71   : > { %405 = vrot.lane.b32.xlu0 %v224_v10, %s902_s27  ;;  %407 = vrot.lane.b32.xlu1 %v383_v19, %s902_s27 }
  0x75   : > { %431 = vrot.lane.b32.xlu0 %v208_v8, %s901_s26  ;;  %335 = vrot.lane.b32.xlu1 %v224_v10, %s903_s29 }
  0x79   : > { %337 = vrot.lane.b32.xlu0 %v321_v21, %s903_s29  ;;  %403 = vrot.lane.b32.xlu1 %v208_v8, %s902_s27 }
  0x7d   : > { %333 = vrot.lane.b32.xlu0 %v208_v8, %s903_s29  ;;  %467 = vrot.lane.b32.xlu1 %v224_v10, %s904_s30 }
  0x81   : > { %469 = vrot.lane.b32.xlu0 %v453_v22, %s904_s30  ;;  %465 = vrot.lane.b32.xlu1 %v208_v8, %s904_s30 }
  0xc7   : > { %v304_v24 = vpop.permute.xlu0 %303  ;;  %v226_v25 = vpop.permute.xlu1 %225 }
  0xcb   : > { %v230_v26 = vpop.permute.xlu0 %229  ;;  %v300_v27 = vpop.permute.xlu1 %299 }
  0xcf   : > { %v302_v28 = vpop.permute.xlu0 %301  ;;  %v228_v29 = vpop.permute.xlu1 %227 }
  0xd0   : > { %v306_v31 = vsel %vm305_vm7, %v300_v27, %v302_v28  ;;  %v307_v32 = vsel %vm305_vm7, %v302_v28, %v304_v24  ;;  %v232_v33 = vsel %vm231_vm8, %v226_v25, %v228_v29  ;;  %v233_v34 = vsel %vm231_vm8, %v228_v29, %v230_v26 }
  0xd1   : > { %v310_v35 = vsel %vm189_vm1, %v306_v31, 0.0  ;;  %v311_v36 = vsel %vm190_vm2, %v307_v32, 0.0  ;;  %v236_v37 = vsel %vm181_vm0, %v232_v33, 0.0  ;;  %v241_v38 = vrot.slane %v233_v34, 4 }
  0xd2   : > { %v314_v39 = vrot.slane %v310_v35, 4  ;;  %v315_v40 = vrot.slane %v311_v36, 4  ;;  %v240_v41 = vrot.slane %v236_v37, 4  ;;  %vm339_vm0 = vcmask 769024   ;;  %v480_v37 = vld [vmem:[#allocation6] sm:$0xff] }
  0xd3   : > { %245 = vst [vmem:[#allocation2 + $0x8] sm:$0xf0] %v241_v38  ;;  %v268_v42 = vpop.permute.xlu0 %267  ;;  %v270_v43 = vpop.permute.xlu1 %269  ;;  %vm471_vm2 = vcmask 490496  }
  0xd4   : > { %318 = vst [vmem:[#allocation2 + $0x10] sm:$0xf0] %v314_v39  ;;  %319 = vst [vmem:[#allocation2 + $0x18] sm:$0xf0] %v315_v40  ;;  %v273_v44 = vsel %vm271_vm9, %v268_v42, %v270_v43 }
  0xd5   : > { %244 = vst [vmem:[#allocation2] sm:$0xf0] %v240_v41  ;;  %v277_v45 = vsel %vm255_vm4, %v273_v44, 0.0 }
  0xd6   : > { %279 = vst [vmem:[#allocation2 + $0x18] sm:$0xf] %v277_v45 }
  0xd7   : > { %v266_v46 = vpop.permute.xlu0 %265  ;;  %v364_v47 = vpop.permute.xlu1 %363 }
  0xd8   : > { %v272_v48 = vsel %vm271_vm9, %v266_v46, %v268_v42 }
  0xd9   : > { %v276_v49 = vsel %vm256_vm11, %v272_v48, 0.0 }
  0xda   : > { %278 = vst [vmem:[#allocation2 + $0x10] sm:$0xf] %v276_v49  ;;  %v482_v54 = vld [vmem:[#allocation2 + $0x8] sm:$0xff] }
  0xdb   : > { %v366_v50 = vpop.permute.xlu0 %365  ;;  %v434_v51 = vpop.permute.xlu1 %433 }
  0xdc   : > { %v369_v52 = vsel %vm367_vm12, %v364_v47, %v366_v50  ;;  %v481_v0 = vld [vmem:[#allocation2] sm:$0xff] }
  0xdd   : > { %v373_v53 = vsel %vm255_vm4, %v369_v52, 0.0  ;;  %v484_v55 = vld [vmem:[#allocation2 + $0x18] sm:$0xff] }
  0xde   : > { %v377_v56 = vrot.slane %v373_v53, 4  ;;  %v687_v57 = vpack.c.bf16 %v484_v55, %v482_v54 }
  0xdf   : > { %v436_v58 = vpop.permute.xlu0 %435  ;;  %v362_v59 = vpop.permute.xlu1 %361 }
  0xe0   : > { %381 = vst [vmem:[#allocation2 + $0x28] sm:$0xf0] %v377_v56  ;;  %v439_v60 = vsel %vm437_vm13, %v434_v51, %v436_v58  ;;  %v368_v61 = vsel %vm367_vm12, %v362_v59, %v364_v47  ;;  %688 = vmatprep.subr.bf16.mxu0 %v687_v57 }
  0xe1   : > { %v443_v62 = vsel %vm389_vm5, %v439_v60, 0.0  ;;  %v372_v63 = vsel %vm254_vm10, %v368_v61, 0.0  ;;  %v483_v1 = vld [vmem:[#allocation2 + $0x10] sm:$0xff] }
  0xe2   : > { %v447_v2 = vrot.slane %v443_v62, 4  ;;  %v376_v3 = vrot.slane %v372_v63, 4  ;;  %v689_v4 = vpack.c.bf16 %v483_v1, %v481_v0 }
  0xe3   : > { %v406_v5 = vpop.permute.xlu0 %405  ;;  %v408_v7 = vpop.permute.xlu1 %407 }
  0xe4   : > { %451 = vst [vmem:[#allocation2 + $0x38] sm:$0xf0] %v447_v2  ;;  %380 = vst [vmem:[#allocation2 + $0x20] sm:$0xf0] %v376_v3  ;;  %v411_v8 = vsel %vm409_vm14, %v406_v5, %v408_v7  ;;  %690 = vmatpush1.bf16.msra.mxu0 %v689_v4 }
  0xe5   : > { %v415_v10 = vsel %vm393_vm15, %v411_v8, 0.0 }
  0xe6   : > { %417 = vst [vmem:[#allocation2 + $0x38] sm:$0xf] %v415_v10 }
  0xe7   : > { %v432_v11 = vpop.permute.xlu0 %431  ;;  %v336_v12 = vpop.permute.xlu1 %335 }
  0xe8   : > { %v438_v13 = vsel %vm437_vm13, %v432_v11, %v434_v51 }
  0xe9   : > { %v446_v14 = vrot.slane %v438_v13, 4 }
  0xeb   : > { %450 = vst [vmem:[#allocation2 + $0x30] sm:$0xf0] %v446_v14  ;;  %v338_v9 = vpop.permute.xlu0 %337  ;;  %v404_v15 = vpop.permute.xlu1 %403 }
  0xec   : > { %v341_v16 = vsel %vm339_vm0, %v336_v12, %v338_v9  ;;  %v410_v17 = vsel %vm409_vm14, %v404_v15, %v406_v5 }
  0xed   : > { %347 = vst [vmem:[#allocation2 + $0x28] sm:$0xf] %v341_v16  ;;  %v414_v18 = vsel %vm189_vm1, %v410_v17, 0.0  ;;  %v488_v28 = vld [vmem:[#allocation2 + $0x38] sm:$0xff]  ;;  %vm495_vm1 = vcmask 1043456  }
  0xee   : > { %416 = vst [vmem:[#allocation2 + $0x30] sm:$0xf] %v414_v18 }
  0xef   : > { %v334_v19 = vpop.permute.xlu0 %333  ;;  %v468_v21 = vpop.permute.xlu1 %467 }
  0xf0   : > { %v340_v22 = vsel %vm339_vm0, %v334_v19, %v336_v12 }
  0xf1   : > { %346 = vst [vmem:[#allocation2 + $0x20] sm:$0xf] %v340_v22 }
  0xf3   : > { %v470_v23 = vpop.permute.xlu0 %469  ;;  %v466_v24 = vpop.permute.xlu1 %465 }
  0xf4   : > { %v473_v25 = vsel %vm471_vm2, %v468_v21, %v470_v23  ;;  %v472_v26 = vsel %vm471_vm2, %v466_v24, %v468_v21  ;;  %v486_v27 = vld [vmem:[#allocation2 + $0x28] sm:$0xff] }
  0xf5   : > { %v477_v29 = vsel %vm1116_vm6, %v473_v25, 0.0  ;;  %v476_v31 = vsel %vm254_vm10, %v472_v26, 0.0  ;;  %v691_v6 = vpack.c.bf16 %v488_v28, %v486_v27  ;;  %v487_v33 = vld [vmem:[#allocation2 + $0x30] sm:$0xff] }
  0xf6   : > { %479 = vst [vmem:[#allocation2 + $0x48] sm:$0xf] %v477_v29  ;;  %478 = vst [vmem:[#allocation2 + $0x40] sm:$0xf] %v476_v31 }
  0xf7   : > { %692 = vmatprep.subr.bf16.mxu0 %v691_v6 }
  0xf8   : > { %v485_v32 = vld [vmem:[#allocation2 + $0x20] sm:$0xff] }
  0xf9   : > { %v693_v34 = vpack.c.bf16 %v487_v33, %v485_v32 }
  0xfb   : > { %694 = vmatpush1.bf16.msra.mxu0 %v693_v34 }
  0xfd   : > { %v490_v35 = vld [vmem:[#allocation2 + $0x48] sm:$0xf]  ;;  %v489_v36 = vld [vmem:[#allocation2 + $0x40] sm:$0xf] }
  0xfe   : > { %678 = vmatprep.subr.msk.mxu0 %vm495_vm1, %v490_v35 }
  0xff   : > { %679 = vmatpush1.msk.msra.mxu0 %vm495_vm1, %v489_v36 }
 0x100   : > { %680 = vmatmul.mubr.msk.f32.vlgmr.msra.gmra.mrb[0].mxu0 %vm491_vm3, %v480_v37 }
 0x1d3   : > { %v568_v20 = vpop.f32.mrb[0].mxu0 }
 0x1d4   : > { %573 = vst [vmem:[%s172_s4] sm:$0xff] %v568_v20  ;;  %v570_v30 = vpop.f32.mrb[1].mxu0 }
 0x1d5   : > { %574 = vst [vmem:[%s172_s4 + $0x8] sm:$0xff] %v570_v30 }
 0x1d6   : > { %836 = shalt.err (!%p833_p10)
}
 0x1d7   : > { %s837_s19 = scalar_lea.hbm %s1168_s21, 256  ;;  %s841_s24 = scalar_lea.hbm %s1212_s2, 512 }
 0x1d8   : > { %p838_p1 = scmp.ne.s32.totalorder %s1168_s21, %s837_s19  ;;  %p842_p3 = scmp.lt.u32.totalorder %s1168_s21, %s1212_s2 }
 0x1d9   : > { %p843_p0 = scmp.lt.u32.totalorder %s841_s24, %s837_s19  ;;  %p845_p6 = scmp.lt.u32.totalorder %s837_s19, %s1168_s21 }
 0x1da   : > { %p839_p2 = pnand %p838_p1, %p1014_p8 }
 0x1db   : > { %p844_p4 = por %p843_p0, %p842_p3 }
 0x1dc   : > { %p840_p7 = pneg %p839_p2 }
 0x1dd   : > { %p846_p9 = por %p845_p6, %p844_p4 }
 0x1df   : > { %p847_p12 = pnand %p846_p9, %p840_p7 }
 0x1e1   : > { %850 = shalt.err (!%p847_p12)
}
 0x1e2   : > { %704 = dma.vmem_to_hbm [thread:$0]  (%p1014_p8), %s1163_s5, 256, %s1168_s21, %s576_s23  }
 0x1e3 PF: > { %s602_s29 = sand.u32 1, %s881_s9   ;;  %p1233_p13 = scmp.ne.s32.totalorder %s1217_s16, 0 }
 0x1e4   : > { %p1234_p11 = scmp.ge.s32.totalorder %s893_s12, 2  ;;  %s603_s30 = scalar_lea.sflag [#allocation5], %s602_s29 }
 0x1e6   : > { %p715_p5 = pnand %p1234_p11, %p1233_p13 }
 0x1e8   : > { %876 = dma.done.wait (!%p715_p5), %s603_s30, 256  }
 0x1e9   : > { %878 = vsyncadd (!%p715_p5), %s603_s30, 4294967040  ;;  %p16_p10 = scmp.ge.s32.totalorder %s970_s20, 4   ;;  %s1235_s9 = smov %s885_s10 }
 0x1ea   : > { %s1236_s10 = smov %s889_s11  ;;  %s1237_s11 = smov %s1006_s7 }
 0x1eb   : > { %s1238_s12 = smov %s970_s20  ;;  %18 = sbr.rel (!%p16_p10) target bundleno = 6 (0x6), region = 77 }
 0x1f2   :  { %608 = vsyncpa [#allocation4], 1 }
 0x1f3   :  { %610 = vsyncpa [#allocation4 + $0x1], 1 }
 0x1f4   :  { %611 = vsyncpa [#allocation7], 1 }
 0x1f5   :  { %612 = vsyncpa [#allocation5], 1 }
 0x1f6   :  { %614 = vsyncpa [#allocation5 + $0x1], 1 }

</bundles_post_ra>
